<compile_context>
chip_gen: v5e
topology: v5e:2x2
jax: 0.10.0
libtpu: 0.0.40
codegen_flags: <defaults>
</compile_context>

<pallas_src>
import jax
import jax.numpy as jnp
from jax import lax
from jax.experimental import pallas as pl
from jax.experimental.pallas import tpu as pltpu


# ------------------------------------------------------------------
# Fused TGCNCell kernel
# ------------------------------------------------------------------
def _tgcn_cell_kernel(inp_row_ref, hid_ref, lap_ref, lap2_ref,
                      w1h_ref, w1i_ref, b1_ref,
                      w2h_ref, w2i_ref, b2_ref,
                      out_ref):
    B, N, H = hid_ref.shape
    f32 = jnp.float32

    lap = lap_ref[...]        # (N, N)
    lap2 = lap2_ref[...]      # (2N, N), row p = lap[p // 2]
    w1h = w1h_ref[...]        # (H, 2H)
    w1i = w1i_ref[...]        # (1, 2H)
    b1 = b1_ref[...]          # (1, 2H)
    w2h = w2h_ref[...]        # (H, H)
    w2i = w2i_ref[...]        # (1, H)
    b2 = b2_ref[...]          # (1, H)

    # Parity mask over the 2N rows of the "doubled" conv-1 output.
    row = lax.broadcasted_iota(jnp.int32, (2 * N, 1), 0)
    even = (row % 2) == 0

    for b in range(B):        # B is small and static -> unrolled
        hid_b = hid_ref[b]         # (N, H)
        inp_b = inp_row_ref[b]     # (1, N)

        # ---- graph_conv1 (+ sigmoid) on the row-doubled Laplacian ---------
        # s[p, c] = sigmoid(((L @ [inp, hid]) @ W1)[p // 2, c] + b1[c])
        ah = jnp.dot(lap2, hid_b, preferred_element_type=f32)          # (2N, H)
        ai = jnp.sum(lap2 * inp_b, axis=1, keepdims=True)              # (2N, 1) = lap2 @ inp
        s = jax.nn.sigmoid(
            jnp.dot(ah, w1h, preferred_element_type=f32) + ai * w1i + b1)  # (2N, 2H)

        # ---- exact torch.chunk(flat, 2, dim=1) semantics -------------------
        # even rows take columns [:H], odd rows take columns [H:].
        sel = jnp.where(even, s[:, :H], s[:, H:])                      # (2N, H)
        r = sel[:N]                                                    # (N, H)
        u = sel[N:]                                                    # (N, H)

        # ---- graph_conv2 (+ tanh) on [inp, r * hidden] ---------------------
        rh = r * hid_b                                                 # (N, H)
        ar = jnp.dot(lap, rh, preferred_element_type=f32)              # (N, H)
        ai2 = jnp.sum(lap * inp_b, axis=1, keepdims=True)              # (N, 1) = lap @ inp
        c = jnp.tanh(
            jnp.dot(ar, w2h, preferred_element_type=f32) + ai2 * w2i + b2)  # (N, H)

        # ---- GRU update -----------------------------------------------------
        out_ref[b] = u * hid_b + (1.0 - u) * c


# ------------------------------------------------------------------
# Wrapper
# ------------------------------------------------------------------
def tgcn_cell_forward(params, inputs, hidden_state):
    """inputs: (B, N); hidden_state: (B, N*H) -> (new_h, new_h), each (B, N*H)."""
    B, N = inputs.shape
    H = hidden_state.shape[1] // N

    inp_row = inputs.reshape(B, 1, N).astype(jnp.float32)
    hid3 = hidden_state.reshape(B, N, H).astype(jnp.float32)

    vmem = pl.BlockSpec(memory_space=pltpu.MemorySpace.VMEM)
    new3 = pl.pallas_call(
        _tgcn_cell_kernel,
        out_shape=jax.ShapeDtypeStruct((B, N, H), jnp.float32),
        in_specs=[vmem] * 10,
        out_specs=vmem,
    )(inp_row, hid3,
      params["lap"], params["lap2"],
      params["w1_hid"], params["w1_in"], params["b1"],
      params["w2_hid"], params["w2_in"], params["b2"])

    new_h = new3.reshape(B, N * H)
    return new_h, new_h


# ------------------------------------------------------------------
# Parameter setup (plain JAX)
# ------------------------------------------------------------------
def calculate_laplacian_with_self_loop(adj):
    n = adj.shape[0]
    m = adj + jnp.eye(n, dtype=adj.dtype)
    row_sum = m.sum(axis=1)
    d_inv_sqrt = jnp.power(row_sum, -0.5)
    d_inv_sqrt = jnp.where(jnp.isinf(d_inv_sqrt), 0.0, d_inv_sqrt)
    d_mat = jnp.diag(d_inv_sqrt)
    return (m @ d_mat).T @ d_mat


def xavier_uniform(key, shape):
    fan_in, fan_out = shape
    limit = jnp.sqrt(6.0 / (fan_in + fan_out))
    return jax.random.uniform(key, shape, jnp.float32, -limit, limit)


def init_tgcn_cell_params(key, adj, hidden_dim):
    H = int(hidden_dim)
    k1, k2 = jax.random.split(key)
    lap = calculate_laplacian_with_self_loop(adj.astype(jnp.float32))
    w1 = xavier_uniform(k1, (H + 1, 2 * H))    # graph_conv1: bias init 1.0
    w2 = xavier_uniform(k2, (H + 1, H))        # graph_conv2: bias init 0.0
    return {
        "lap": lap,
        "lap2": jnp.repeat(lap, 2, axis=0),            # row p = lap[p // 2]
        "w1_in": w1[0:1, :], "w1_hid": w1[1:, :],
        "b1": jnp.full((1, 2 * H), 1.0, jnp.float32),
        "w2_in": w2[0:1, :], "w2_hid": w2[1:, :],
        "b2": jnp.zeros((1, H), jnp.float32),
    }


# ------------------------------------------------------------------
# Pure-JAX transcription of the PyTorch forward (validation only)
# ------------------------------------------------------------------
def _tgcn_cell_reference(params, inputs, hidden_state):
    lap = params["lap"]
    B, N = inputs.shape
    H = hidden_state.shape[1] // N
    w1 = jnp.concatenate([params["w1_in"], params["w1_hid"]], axis=0)
    w2 = jnp.concatenate([params["w2_in"], params["w2_hid"]], axis=0)

    def graph_conv(w, b, hidden_flat, out_dim):
        x = jnp.concatenate(
            [inputs.reshape(B, N, 1), hidden_flat.reshape(B, N, H)], axis=2)
        x = x.transpose(1, 2, 0).reshape(N, (H + 1) * B)
        ax = lap @ x
        ax = ax.reshape(N, H + 1, B).transpose(2, 0, 1).reshape(B * N, H + 1)
        out = ax @ w + b.reshape(-1)
        return out.reshape(B, N * out_dim)

    conc = jax.nn.sigmoid(graph_conv(w1, params["b1"], hidden_state, 2 * H))
    r, u = conc[:, : N * H], conc[:, N * H:]
    c = jnp.tanh(graph_conv(w2, params["b2"], r * hidden_state, H))
    return u * hidden_state + (1.0 - u) * c


# ------------------------------------------------------------------
# Demo
# ------------------------------------------------------------------
if __name__ == "__main__":
    B, N, H = 2, 16, 32

    key = jax.random.PRNGKey(0)
    k_adj, k_in, k_hid, k_par = jax.random.split(key, 4)

    # deterministic symmetric 0/1 adjacency
    a = (jax.random.uniform(k_adj, (N, N)) > 0.6).astype(jnp.float32)
    adj = jnp.maximum(a, a.T)

    inputs = jax.random.normal(k_in, (B, N), jnp.float32)
    hidden_state = jax.random.normal(k_hid, (B, N * H), jnp.float32)

    params = init_tgcn_cell_params(k_par, adj, H)

    new_h, out = jax.jit(tgcn_cell_forward)(params, inputs, hidden_state)
    jax.block_until_ready(new_h)

    assert new_h.shape == (B, N * H)
    assert bool(jnp.all(jnp.isfinite(new_h)))

    ref = _tgcn_cell_reference(params, inputs, hidden_state)
    max_err = float(jnp.max(jnp.abs(new_h - ref)))
    assert jnp.allclose(new_h, ref, rtol=1e-4, atol=1e-4), max_err

    print("KERNEL_OK")
</pallas_src>

<mosaic_0001>
module attributes {stable_mosaic.version = 11 : i64} {
  func.func @_tgcn_cell_kernel(%arg0: memref<2x1x16xf32, #tpu.memory_space<vmem>>, %arg1: memref<2x16x32xf32, #tpu.memory_space<vmem>>, %arg2: memref<16x16xf32, #tpu.memory_space<vmem>>, %arg3: memref<32x16xf32, #tpu.memory_space<vmem>>, %arg4: memref<32x64xf32, #tpu.memory_space<vmem>>, %arg5: memref<1x64xf32, #tpu.memory_space<vmem>>, %arg6: memref<1x64xf32, #tpu.memory_space<vmem>>, %arg7: memref<32x32xf32, #tpu.memory_space<vmem>>, %arg8: memref<1x32xf32, #tpu.memory_space<vmem>>, %arg9: memref<1x32xf32, #tpu.memory_space<vmem>>, %arg10: memref<2x16x32xf32, #tpu.memory_space<vmem>>) attributes {dimension_semantics = [], scalar_prefetch = 0 : i64, scratch_operands = 0 : i64, tpu.core_type = #tpu.core_type<tc>} {
    %c0 = arith.constant 0 : index
    %c0_0 = arith.constant 0 : index
    %0 = vector.load %arg2[%c0, %c0_0] : memref<16x16xf32, #tpu.memory_space<vmem>>, vector<16x16xf32>
    %c0_1 = arith.constant 0 : index
    %c0_2 = arith.constant 0 : index
    %1 = vector.load %arg3[%c0_1, %c0_2] : memref<32x16xf32, #tpu.memory_space<vmem>>, vector<32x16xf32>
    %c0_3 = arith.constant 0 : index
    %c0_4 = arith.constant 0 : index
    %2 = vector.load %arg4[%c0_3, %c0_4] : memref<32x64xf32, #tpu.memory_space<vmem>>, vector<32x64xf32>
    %c0_5 = arith.constant 0 : index
    %c0_6 = arith.constant 0 : index
    %3 = vector.load %arg5[%c0_5, %c0_6] : memref<1x64xf32, #tpu.memory_space<vmem>>, vector<1x64xf32>
    %c0_7 = arith.constant 0 : index
    %c0_8 = arith.constant 0 : index
    %4 = vector.load %arg6[%c0_7, %c0_8] : memref<1x64xf32, #tpu.memory_space<vmem>>, vector<1x64xf32>
    %c0_9 = arith.constant 0 : index
    %c0_10 = arith.constant 0 : index
    %5 = vector.load %arg7[%c0_9, %c0_10] : memref<32x32xf32, #tpu.memory_space<vmem>>, vector<32x32xf32>
    %c0_11 = arith.constant 0 : index
    %c0_12 = arith.constant 0 : index
    %6 = vector.load %arg8[%c0_11, %c0_12] : memref<1x32xf32, #tpu.memory_space<vmem>>, vector<1x32xf32>
    %c0_13 = arith.constant 0 : index
    %c0_14 = arith.constant 0 : index
    %7 = vector.load %arg9[%c0_13, %c0_14] : memref<1x32xf32, #tpu.memory_space<vmem>>, vector<1x32xf32>
    %8 = tpu.iota {dimensions = array<i32: 0>} : vector<32x1xi32>
    %c2_i32 = arith.constant 2 : i32
    %c0_i32 = arith.constant 0 : i32
    %9 = arith.cmpi eq, %c2_i32, %c0_i32 : i32
    %c1_i32 = arith.constant 1 : i32
    %10 = arith.select %9, %c1_i32, %c2_i32 : i32
    %11 = vector.broadcast %10 : i32 to vector<32x1xi32>
    %12 = arith.remsi %8, %11 : vector<32x1xi32>
    %c0_i32_15 = arith.constant 0 : i32
    %13 = vector.broadcast %c0_i32_15 : i32 to vector<32x1xi32>
    %14 = arith.cmpi ne, %12, %13 : vector<32x1xi32>
    %c0_i32_16 = arith.constant 0 : i32
    %15 = vector.broadcast %c0_i32_16 : i32 to vector<32x1xi32>
    %16 = arith.cmpi slt, %12, %15 : vector<32x1xi32>
    %c0_i32_17 = arith.constant 0 : i32
    %17 = arith.cmpi slt, %10, %c0_i32_17 : i32
    %18 = vector.broadcast %17 : i1 to vector<32x1xi1>
    %19 = vector.broadcast %18 : vector<32x1xi1> to vector<32x1xi1>
    %20 = arith.xori %16, %19 : vector<32x1xi1>
    %21 = arith.andi %20, %14 : vector<32x1xi1>
    %22 = vector.broadcast %10 : i32 to vector<32x1xi32>
    %23 = arith.addi %12, %22 : vector<32x1xi32>
    %24 = arith.select %21, %23, %12 : vector<32x1xi1>, vector<32x1xi32>
    %c0_i32_18 = arith.constant 0 : i32
    %25 = vector.broadcast %c0_i32_18 : i32 to vector<32x1xi32>
    %26 = arith.cmpi eq, %24, %25 : vector<32x1xi32>
    %c0_19 = arith.constant 0 : index
    %c0_20 = arith.constant 0 : index
    %c0_21 = arith.constant 0 : index
    %27 = vector.load %arg1[%c0_19, %c0_20, %c0_21] : memref<2x16x32xf32, #tpu.memory_space<vmem>>, vector<1x16x32xf32>
    %28 = vector.shape_cast %27 : vector<1x16x32xf32> to vector<16x32xf32>
    %c0_22 = arith.constant 0 : index
    %c0_23 = arith.constant 0 : index
    %c0_24 = arith.constant 0 : index
    %29 = vector.load %arg0[%c0_22, %c0_23, %c0_24] : memref<2x1x16xf32, #tpu.memory_space<vmem>>, vector<1x1x16xf32>
    %30 = vector.shape_cast %29 : vector<1x1x16xf32> to vector<1x16xf32>
    %cst = arith.constant dense<0.000000e+00> : vector<32x32xf32>
    %31 = tpu.matmul %1, %28, %cst {dimension_numbers = #tpu.dot_dimension_numbers<[1], [0], [0], [1], [0, 0, 1, 1], [], []>} : vector<32x16xf32>, vector<16x32xf32>, vector<32x32xf32> -> vector<32x32xf32>
    %32 = vector.broadcast %30 : vector<1x16xf32> to vector<32x16xf32>
    %33 = arith.mulf %1, %32 : vector<32x16xf32>
    %cst_25 = arith.constant dense<0.000000e+00> : vector<32xf32>
    %34 = vector.multi_reduction <add>, %33, %cst_25 [1] : vector<32x16xf32> to vector<32xf32>
    %35 = vector.shape_cast %34 : vector<32xf32> to vector<32x1xf32>
    %cst_26 = arith.constant dense<0.000000e+00> : vector<32x64xf32>
    %36 = tpu.matmul %31, %2, %cst_26 {dimension_numbers = #tpu.dot_dimension_numbers<[1], [0], [0], [1], [0, 0, 1, 1], [], []>} : vector<32x32xf32>, vector<32x64xf32>, vector<32x64xf32> -> vector<32x64xf32>
    %37 = vector.broadcast %35 : vector<32x1xf32> to vector<32x64xf32>
    %38 = vector.broadcast %3 : vector<1x64xf32> to vector<32x64xf32>
    %39 = arith.mulf %37, %38 : vector<32x64xf32>
    %40 = arith.addf %36, %39 : vector<32x64xf32>
    %41 = vector.broadcast %4 : vector<1x64xf32> to vector<32x64xf32>
    %42 = arith.addf %40, %41 : vector<32x64xf32>
    %43 = arith.negf %42 : vector<32x64xf32>
    %44 = math.exp %43 : vector<32x64xf32>
    %cst_27 = arith.constant 1.000000e+00 : f32
    %45 = vector.broadcast %cst_27 : f32 to vector<32x64xf32>
    %46 = arith.addf %45, %44 : vector<32x64xf32>
    %47 = arith.divf %45, %46 : vector<32x64xf32>
    %48 = vector.extract_strided_slice %47 {offsets = [0, 0], sizes = [32, 32], strides = [1, 1]} : vector<32x64xf32> to vector<32x32xf32>
    %49 = vector.extract_strided_slice %47 {offsets = [0, 32], sizes = [32, 32], strides = [1, 1]} : vector<32x64xf32> to vector<32x32xf32>
    %50 = vector.shape_cast %26 : vector<32x1xi1> to vector<32x1xi1>
    %51 = vector.broadcast %50 : vector<32x1xi1> to vector<32x32xi1>
    %52 = arith.select %51, %48, %49 : vector<32x32xi1>, vector<32x32xf32>
    %53 = vector.extract_strided_slice %52 {offsets = [0, 0], sizes = [16, 32], strides = [1, 1]} : vector<32x32xf32> to vector<16x32xf32>
    %54 = vector.extract_strided_slice %52 {offsets = [16, 0], sizes = [16, 32], strides = [1, 1]} : vector<32x32xf32> to vector<16x32xf32>
    %55 = arith.mulf %53, %28 : vector<16x32xf32>
    %cst_28 = arith.constant dense<0.000000e+00> : vector<16x32xf32>
    %56 = tpu.matmul %0, %55, %cst_28 {dimension_numbers = #tpu.dot_dimension_numbers<[1], [0], [0], [1], [0, 0, 1, 1], [], []>} : vector<16x16xf32>, vector<16x32xf32>, vector<16x32xf32> -> vector<16x32xf32>
    %57 = vector.broadcast %30 : vector<1x16xf32> to vector<16x16xf32>
    %58 = arith.mulf %0, %57 : vector<16x16xf32>
    %cst_29 = arith.constant dense<0.000000e+00> : vector<16xf32>
    %59 = vector.multi_reduction <add>, %58, %cst_29 [1] : vector<16x16xf32> to vector<16xf32>
    %60 = vector.shape_cast %59 : vector<16xf32> to vector<16x1xf32>
    %cst_30 = arith.constant dense<0.000000e+00> : vector<16x32xf32>
    %61 = tpu.matmul %56, %5, %cst_30 {dimension_numbers = #tpu.dot_dimension_numbers<[1], [0], [0], [1], [0, 0, 1, 1], [], []>} : vector<16x32xf32>, vector<32x32xf32>, vector<16x32xf32> -> vector<16x32xf32>
    %62 = vector.broadcast %60 : vector<16x1xf32> to vector<16x32xf32>
    %63 = vector.broadcast %6 : vector<1x32xf32> to vector<16x32xf32>
    %64 = arith.mulf %62, %63 : vector<16x32xf32>
    %65 = arith.addf %61, %64 : vector<16x32xf32>
    %66 = vector.broadcast %7 : vector<1x32xf32> to vector<16x32xf32>
    %67 = arith.addf %65, %66 : vector<16x32xf32>
    %68 = math.tanh %67 : vector<16x32xf32>
    %69 = arith.mulf %54, %28 : vector<16x32xf32>
    %cst_31 = arith.constant 1.000000e+00 : f32
    %70 = vector.broadcast %cst_31 : f32 to vector<16x32xf32>
    %71 = arith.subf %70, %54 : vector<16x32xf32>
    %72 = arith.mulf %71, %68 : vector<16x32xf32>
    %73 = arith.addf %69, %72 : vector<16x32xf32>
    %c0_32 = arith.constant 0 : index
    %c0_33 = arith.constant 0 : index
    %c0_34 = arith.constant 0 : index
    %74 = vector.load %arg10[%c0_32, %c0_33, %c0_34] : memref<2x16x32xf32, #tpu.memory_space<vmem>>, vector<1x16x32xf32>
    %75 = vector.shape_cast %74 : vector<1x16x32xf32> to vector<16x32xf32>
    %76 = vector.shape_cast %73 : vector<16x32xf32> to vector<1x16x32xf32>
    tpu.vector_store %arg10[%c0_32, %c0_33, %c0_34], %76 {strides = array<i32>} : memref<2x16x32xf32, #tpu.memory_space<vmem>>, vector<1x16x32xf32>,
    %c1 = arith.constant 1 : index
    %c0_35 = arith.constant 0 : index
    %c0_36 = arith.constant 0 : index
    %77 = vector.load %arg1[%c1, %c0_35, %c0_36] : memref<2x16x32xf32, #tpu.memory_space<vmem>>, vector<1x16x32xf32>
    %78 = vector.shape_cast %77 : vector<1x16x32xf32> to vector<16x32xf32>
    %c1_37 = arith.constant 1 : index
    %c0_38 = arith.constant 0 : index
    %c0_39 = arith.constant 0 : index
    %79 = vector.load %arg0[%c1_37, %c0_38, %c0_39] : memref<2x1x16xf32, #tpu.memory_space<vmem>>, vector<1x1x16xf32>
    %80 = vector.shape_cast %79 : vector<1x1x16xf32> to vector<1x16xf32>
    %cst_40 = arith.constant dense<0.000000e+00> : vector<32x32xf32>
    %81 = tpu.matmul %1, %78, %cst_40 {dimension_numbers = #tpu.dot_dimension_numbers<[1], [0], [0], [1], [0, 0, 1, 1], [], []>} : vector<32x16xf32>, vector<16x32xf32>, vector<32x32xf32> -> vector<32x32xf32>
    %82 = vector.broadcast %80 : vector<1x16xf32> to vector<32x16xf32>
    %83 = arith.mulf %1, %82 : vector<32x16xf32>
    %cst_41 = arith.constant dense<0.000000e+00> : vector<32xf32>
    %84 = vector.multi_reduction <add>, %83, %cst_41 [1] : vector<32x16xf32> to vector<32xf32>
    %85 = vector.shape_cast %84 : vector<32xf32> to vector<32x1xf32>
    %cst_42 = arith.constant dense<0.000000e+00> : vector<32x64xf32>
    %86 = tpu.matmul %81, %2, %cst_42 {dimension_numbers = #tpu.dot_dimension_numbers<[1], [0], [0], [1], [0, 0, 1, 1], [], []>} : vector<32x32xf32>, vector<32x64xf32>, vector<32x64xf32> -> vector<32x64xf32>
    %87 = vector.broadcast %85 : vector<32x1xf32> to vector<32x64xf32>
    %88 = vector.broadcast %3 : vector<1x64xf32> to vector<32x64xf32>
    %89 = arith.mulf %87, %88 : vector<32x64xf32>
    %90 = arith.addf %86, %89 : vector<32x64xf32>
    %91 = vector.broadcast %4 : vector<1x64xf32> to vector<32x64xf32>
    %92 = arith.addf %90, %91 : vector<32x64xf32>
    %93 = arith.negf %92 : vector<32x64xf32>
    %94 = math.exp %93 : vector<32x64xf32>
    %cst_43 = arith.constant 1.000000e+00 : f32
    %95 = vector.broadcast %cst_43 : f32 to vector<32x64xf32>
    %96 = arith.addf %95, %94 : vector<32x64xf32>
    %97 = arith.divf %95, %96 : vector<32x64xf32>
    %98 = vector.extract_strided_slice %97 {offsets = [0, 0], sizes = [32, 32], strides = [1, 1]} : vector<32x64xf32> to vector<32x32xf32>
    %99 = vector.extract_strided_slice %97 {offsets = [0, 32], sizes = [32, 32], strides = [1, 1]} : vector<32x64xf32> to vector<32x32xf32>
    %100 = vector.shape_cast %26 : vector<32x1xi1> to vector<32x1xi1>
    %101 = vector.broadcast %100 : vector<32x1xi1> to vector<32x32xi1>
    %102 = arith.select %101, %98, %99 : vector<32x32xi1>, vector<32x32xf32>
    %103 = vector.extract_strided_slice %102 {offsets = [0, 0], sizes = [16, 32], strides = [1, 1]} : vector<32x32xf32> to vector<16x32xf32>
    %104 = vector.extract_strided_slice %102 {offsets = [16, 0], sizes = [16, 32], strides = [1, 1]} : vector<32x32xf32> to vector<16x32xf32>
    %105 = arith.mulf %103, %78 : vector<16x32xf32>
    %cst_44 = arith.constant dense<0.000000e+00> : vector<16x32xf32>
    %106 = tpu.matmul %0, %105, %cst_44 {dimension_numbers = #tpu.dot_dimension_numbers<[1], [0], [0], [1], [0, 0, 1, 1], [], []>} : vector<16x16xf32>, vector<16x32xf32>, vector<16x32xf32> -> vector<16x32xf32>
    %107 = vector.broadcast %80 : vector<1x16xf32> to vector<16x16xf32>
    %108 = arith.mulf %0, %107 : vector<16x16xf32>
    %cst_45 = arith.constant dense<0.000000e+00> : vector<16xf32>
    %109 = vector.multi_reduction <add>, %108, %cst_45 [1] : vector<16x16xf32> to vector<16xf32>
    %110 = vector.shape_cast %109 : vector<16xf32> to vector<16x1xf32>
    %cst_46 = arith.constant dense<0.000000e+00> : vector<16x32xf32>
    %111 = tpu.matmul %106, %5, %cst_46 {dimension_numbers = #tpu.dot_dimension_numbers<[1], [0], [0], [1], [0, 0, 1, 1], [], []>} : vector<16x32xf32>, vector<32x32xf32>, vector<16x32xf32> -> vector<16x32xf32>
    %112 = vector.broadcast %110 : vector<16x1xf32> to vector<16x32xf32>
    %113 = vector.broadcast %6 : vector<1x32xf32> to vector<16x32xf32>
    %114 = arith.mulf %112, %113 : vector<16x32xf32>
    %115 = arith.addf %111, %114 : vector<16x32xf32>
    %116 = vector.broadcast %7 : vector<1x32xf32> to vector<16x32xf32>
    %117 = arith.addf %115, %116 : vector<16x32xf32>
    %118 = math.tanh %117 : vector<16x32xf32>
    %119 = arith.mulf %104, %78 : vector<16x32xf32>
    %cst_47 = arith.constant 1.000000e+00 : f32
    %120 = vector.broadcast %cst_47 : f32 to vector<16x32xf32>
    %121 = arith.subf %120, %104 : vector<16x32xf32>
    %122 = arith.mulf %121, %118 : vector<16x32xf32>
    %123 = arith.addf %119, %122 : vector<16x32xf32>
    %c1_48 = arith.constant 1 : index
    %c0_49 = arith.constant 0 : index
    %c0_50 = arith.constant 0 : index
    %124 = vector.load %arg10[%c1_48, %c0_49, %c0_50] : memref<2x16x32xf32, #tpu.memory_space<vmem>>, vector<1x16x32xf32>
    %125 = vector.shape_cast %124 : vector<1x16x32xf32> to vector<16x32xf32>
    %126 = vector.shape_cast %123 : vector<16x32xf32> to vector<1x16x32xf32>
    tpu.vector_store %arg10[%c1_48, %c0_49, %c0_50], %126 {strides = array<i32>} : memref<2x16x32xf32, #tpu.memory_space<vmem>>, vector<1x16x32xf32>,
    return
  }
}

</mosaic_0001>

<bundles_post_ra>
// kernel: tgcn_cell_forward.1
= control target key start
LH: loop header
LB: loop body
LE: loop exit
PB: predicated region body
PF: predicated region fallthrough
CT: control target
= control target key end

     0   :  { %15 = vsyncpa [#allocation3], 0  ;;  %s1250_s0 = inlined_call_operand.vmem [shape: f32[2,1,16], index: 0, kind: input, shape index: {}]   ;;  %s1251_s1 = inlined_call_operand.vmem [shape: f32[2,16,32], index: 1, kind: input, shape index: {}]   ;;  %s1252_s2 = inlined_call_operand.vmem [shape: f32[16,16], index: 2, kind: input, shape index: {}]   ;;  %s1253_s3 = inlined_call_operand.vmem [shape: f32[32,16], index: 3, kind: input, shape index: {}]   ;;  %s1254_s4 = inlined_call_operand.vmem [shape: f32[32,64], index: 4, kind: input, shape index: {}]   ;;  %s1255_s5 = inlined_call_operand.vmem [shape: f32[1,64], index: 5, kind: input, shape index: {}]   ;;  %s1256_s6 = inlined_call_operand.hbm [shape: f32[1,64], index: 6, kind: input, shape index: {}]   ;;  %s1257_s7 = inlined_call_operand.vmem [shape: f32[32,32], index: 7, kind: input, shape index: {}]   ;;  %s1258_s8 = inlined_call_operand.vmem [shape: f32[1,32], index: 8, kind: input, shape index: {}]   ;;  %s1259_s9 = inlined_call_operand.hbm [shape: f32[1,32], index: 9, kind: input, shape index: {}]   ;;  %s1260_s10 = inlined_call_operand.vmem [shape: f32[2,16,32], index: 10, kind: output, shape index: {}]  }
   0x1   :  { %s34_s15 = sshll.u32 %s1256_s6, 4  ;;  %s35_s15 = int_to_ptr.hbm [resolvable:$true] %s34_s15 }
   0x2   :  { %16 = vsyncpa [#allocation5], 0  ;;  %s873_s16 = smov [#allocation2]   ;;  %s49_s20 = sshll.u32 %s1259_s9, 4  ;;  %s50_s20 = int_to_ptr.hbm [resolvable:$true] %s49_s20 }
   0x3   :  { %s36_s17 = sshll.u32 %s873_s16, 4  ;;  %s874_s21 = smov [#allocation4]   ;;  %s37_s17 = int_to_ptr.vmem [resolvable:$true] %s36_s17 }
   0x4   :  { %39 = dma.hbm_to_vmem [thread:$0]  %s35_s15, 16, %s37_s17, [#allocation3]  }
   0x5   :  { %s51_s22 = sshll.u32 %s874_s21, 4  ;;  %s52_s22 = int_to_ptr.vmem [resolvable:$true] %s51_s22 }
   0x6   :  { %54 = dma.hbm_to_vmem [thread:$0]  %s50_s20, 16, %s52_s22, [#allocation5]  }
   0x7   :  { %869 = dma.done.wait [#allocation3], 16  }
   0x8   :  { %870 = vsyncadd [#allocation3], 4294967280 }
   0x9   :  { %871 = dma.done.wait [#allocation5], 16  }
   0xa   :  { %872 = vsyncadd [#allocation5], 4294967280  ;;  %v940_v0 = vld [vmem:[%s1251_s1 + $0x8] sm:$0xff]  ;;  %v945_v1 = vld [vmem:[%s1251_s1] sm:$0xff]  ;;  %vm141_vm0 = vcmask 130048   ;;  %vm209_vm1 = vcmask 261120   ;;  %v81_v53 = vlaneseq }
   0xb   :  { %168 = vmatpush.msra.mxu0 %v940_v0  ;;  %v951_v2 = vld [vmem:[%s1253_s3] sm:$0xff]  ;;  %v956_v3 = vld [vmem:[%s1254_s4 + $0x18] sm:$0xff]  ;;  %v961_v4 = vld [vmem:[%s1254_s4 + $0x10] sm:$0xff] }
   0xc   :  { %234 = vmatpush.msra.mxu1 %v956_v3  ;;  %v967_v5 = vld [vmem:[%s1254_s4 + $0x8] sm:$0xff]  ;;  %v984_v7 = vld [vmem:[%s1250_s0] ss:$0 sm:$0xff]  ;;  %v1013_v54 = vshrl.u32 %v81_v53, 7  ;;  %v67_v62 = vld [vmem:[%s1253_s3 + $0x10] sm:$0xff] }
   0xd   :  { %169 = vmatpush.msra.mxu0 %v945_v1  ;;  %v977_v6 = vld [vmem:[%s1253_s3 + $0x8] sm:$0xff]  ;;  %v991_v9 = vld [vmem:[%s1254_s4] sm:$0xff]  ;;  %v186_v11 = vmul.f32 %v984_v7, %v951_v2 }
   0xe   :  { %735 = vmatmul.msk.f32.vlgmr.msra.gmra.mxu0 %vm141_vm0, %v951_v2  ;;  %235 = vmatpush.msra.mxu1 %v961_v4  ;;  %v187_v8 = vmul.f32 %v984_v7, %v977_v6  ;;  %v1003_v16 = vld [vmem:[%s1255_s5] ss:$0 sm:$0xff]  ;;  %s875_s5 = smov 96   ;;  %v83_v55 = vadd.s32 8, %v1013_v54  ;;  %v90_v61 = vand.u32 1, %v1013_v54 }
   0xf   :  { %v190_v12 = vsel %vm141_vm0, %v186_v11, 0.0  ;;  %v1006_v19 = vld [vmem:[#allocation2] ss:$0 sm:$0xff]  ;;  %v1030_v63 = vld [vmem:[%s1250_s0 + $0x1] ss:$0 sm:$0xff]  ;;  %v77_v11 = vld [vmem:[%s1257_s7 + $0x10] sm:$0xff] }
  0x10   :  { %236 = vmatpush.msra.mxu1 %v967_v5  ;;  %v193_v10 = vsel %vm141_vm0, %v187_v8, 0.0  ;;  %v97_v56 = vand.u32 1, %v83_v55  ;;  %v78_v8 = vld [vmem:[%s1257_s7 + $0x18] sm:$0xff]  ;;  %vm1035_vm11 = vcmp.eq.s32.totalorder %v90_v61, 0 }
  0x11   :  { %194 = vadd.xlane.f32.xlu0 %v193_v10  ;;  %424 = vmatpush.msra.mxu3 %v78_v8 }
  0x12   :  { %237 = vmatpush.msra.mxu1 %v991_v9  ;;  %vm1016_vm10 = vcmp.eq.s32.totalorder %v97_v56, 0 }
  0x13   :  { %425 = vmatpush.msra.mxu3 %v77_v11 }
  0x14   :  { %703 = vmatpush.msrb.mxu1 %v78_v8 }
  0x16   :  { %736 = vmatmul.msk.f32.gmra.mxu0 %vm141_vm0, %v977_v6  ;;  %704 = vmatpush.msrb.mxu1 %v77_v11 }
  0x19   :  { %191 = vadd.xlane.f32.xlu0 %v190_v12  ;;  %v490_v12 = vmul.f32 %v1030_v63, %v977_v6 }
  0x1e   :  { %737 = vmatmul.msk.f32.gmra.mxu0 %vm141_vm0, %v67_v62 }
  0x84   :  { %v195_v15 = vpop.xlane.xlu0 %194 }
  0x85   :  { %v206_v23 = vmul.f32 %v1003_v16, %v195_v15 }
  0x8b   :  { %v171_v13 = vpop.f32.mrf.mxu0 }
  0x8c   :  { %739 = vmatmul.msk.f32.vlgmr.msra.gmra.mxu1 %vm209_vm1, %v171_v13  ;;  %v192_v17 = vpop.xlane.xlu0 %191  ;;  %v76_v13 = vld [vmem:[%s1257_s7 + $0x8] sm:$0xff] }
  0x8d   :  { %v205_v18 = vmul.f32 %v1003_v16, %v192_v17  ;;  %v496_v17 = vsel %vm141_vm0, %v490_v12, 0.0  ;;  %426 = vmatpush.msra.mxu3 %v76_v13  ;;  %705 = vmatpush.msrb.mxu1 %v76_v13 }
  0x8e   :  { %497 = vadd.xlane.f32.xlu2 %v496_v17 }
  0x93   :  { %v174_v14 = vpop.f32.mrf.mxu0 }
  0x94   :  { %740 = vmatmul.msk.f32.gmra.mxu1 %vm209_vm1, %v174_v14 }
 0x109   :  { %v239_v20 = vpop.f32.mrf.mxu1 }
 0x10a   :  { %v240_v21 = vadd.f32 %v239_v20, %v205_v18  ;;  %v1055_v20 = vld [vmem:[%s1252_s2] sm:$0xff] }
 0x10c   :  { %v254_v22 = vadd.f32 %v1006_v19, %v240_v21  ;;  %v1060_v21 = vld [vmem:[%s1251_s1 + $0x18] sm:$0xff] }
 0x10e   :  { %v743_v24 = vmul.f32 -1.442695, %v254_v22  ;;  %v489_v22 = vmul.f32 %v1030_v63, %v951_v2 }
 0x110   :  { %781 = vpow2.f32 %v743_v24  ;;  %v493_v24 = vsel %vm141_vm0, %v489_v22, 0.0 }
 0x111   :  { %v242_v25 = vpop.f32.mrf.mxu1  ;;  %494 = vadd.xlane.f32.xlu2 %v493_v24 }
 0x112   :  { %v243_v26 = vadd.f32 %v242_v25, %v206_v23  ;;  %v1069_v23 = vld [vmem:[%s1251_s1 + $0x10] sm:$0xff]  ;;  %v1077_v25 = vld [vmem:[%s1252_s2 + $0x8] sm:$0xff] }
 0x114   :  { %v255_v27 = vadd.f32 %v1006_v19, %v243_v26  ;;  %v188_v26 = vmul.f32 %v984_v7, %v67_v62 }
 0x116   :  { %v782_v28 = vpop.eup %781  ;;  %v744_v29 = vmul.f32 -1.442695, %v255_v27  ;;  %v196_v27 = vsel %vm141_vm0, %v188_v26, 0.0 }
 0x117   :  { %v270_v30 = vadd.f32 1.0, %v782_v28  ;;  %v75_v28 = vld [vmem:[%s1257_s7] sm:$0xff] }
 0x118   :  { %783 = vpow2.f32 %v744_v29  ;;  %427 = vmatpush.msra.mxu3 %v75_v28  ;;  %706 = vmatpush.msrb.mxu1 %v75_v28  ;;  %v491_v29 = vmul.f32 %v1030_v63, %v67_v62 }
 0x119   :  { %785 = vrcp.f32 %v270_v30  ;;  %v285_v48 = vand.u32 2147483648, %v270_v30  ;;  %vm279_vm7 = vweird.f32 %v270_v30  ;;  %v283_v49 = vand.u32 2147483647, %v270_v30  ;;  %197 = vadd.xlane.f32.xlu2 %v196_v27 }
 0x11a   :  { %533 = vmatpush.msrb.mxu3 %v956_v3 }
 0x11b   :  { %v286_v51 = vor.u32 1.1754944e-38, %v285_v48  ;;  %vm284_vm9 = vcmp.eq.f32.partialorder %v283_v49, 8.507059e+37 }
 0x11c   :  { %534 = vmatpush.msrb.mxu3 %v961_v4  ;;  %v394_v4 = vmul.f32 %v984_v7, %v1077_v25 }
 0x11e   :  { %v784_v31 = vpop.eup %783  ;;  %535 = vmatpush.msrb.mxu3 %v967_v5  ;;  %v398_v5 = vsel %vm141_vm0, %v394_v4, 0.0 }
 0x11f   :  { %v271_v32 = vadd.f32 1.0, %v784_v31  ;;  %v786_v33 = vpop.eup %785 }
 0x120   :  { %v275_v34 = vmul.f32 %v786_v33, %v270_v30  ;;  %vm280_vm6 = vweird.f32 %v786_v33  ;;  %v499_v30 = vsel %vm141_vm0, %v491_v29, 0.0  ;;  %536 = vmatpush.msrb.mxu3 %v991_v9  ;;  %v177_v9 = vpop.f32.mrf.mxu0 }
 0x121   :  { %787 = vrcp.f32 %v271_v32  ;;  %v300_v39 = vand.u32 2147483648, %v271_v32  ;;  %v298_v41 = vand.u32 2147483647, %v271_v32  ;;  %vm294_vm3 = vweird.f32 %v271_v32  ;;  %vm281_vm8 = vmor %vm279_vm7, %vm280_vm6  ;;  %500 = vadd.xlane.f32.xlu2 %v499_v30  ;;  %741 = vmatmul.msk.f32.gmra.mxu1 %vm209_vm1, %v177_v9 }
 0x122   :  { %v276_v38 = vsub.f32 1.0, %v275_v34  ;;  %v676_v9 = vmul.f32 %v1030_v63, %v1077_v25 }
 0x123   :  { %v301_v44 = vor.u32 1.1754944e-38, %v300_v39  ;;  %vm299_vm5 = vcmp.eq.f32.partialorder %v298_v41, 8.507059e+37 }
 0x124   :  { %v277_v43 = vmul.f32 %v786_v33, %v276_v38 }
 0x126   :  { %v278_v47 = vadd.f32 %v786_v33, %v277_v43 }
 0x127   :  { %v788_v35 = vpop.eup %787 }
 0x128   :  { %v290_v36 = vmul.f32 %v788_v35, %v271_v32  ;;  %vm295_vm2 = vweird.f32 %v788_v35  ;;  %v282_v50 = vsel %vm281_vm8, %v786_v33, %v278_v47 }
 0x129   :  { %vm296_vm4 = vmor %vm294_vm3, %vm295_vm2  ;;  %v287_v52 = vsel %vm284_vm9, %v286_v51, %v282_v50 }
 0x12a   :  { %v291_v37 = vsub.f32 1.0, %v290_v36  ;;  %v498_v36 = vpop.xlane.xlu2 %497 }
 0x12c   :  { %v292_v40 = vmul.f32 %v788_v35, %v291_v37 }
 0x12e   :  { %v293_v42 = vadd.f32 %v788_v35, %v292_v40 }
 0x130   :  { %v297_v45 = vsel %vm296_vm4, %v788_v35, %v293_v42 }
 0x131   :  { %v302_v46 = vsel %vm299_vm5, %v301_v44, %v297_v45  ;;  %v506_v45 = vmul.f32 %v1003_v16, %v498_v36 }
 0x132   :  { %348 = vrot.lane.b32.xlu1 %v302_v46, %s875_s5 }
 0x13a   :  { %346 = vrot.lane.b32.xlu1 %v287_v52, %s875_s5 }
 0x184   :  { %v495_v39 = vpop.xlane.xlu2 %494 }
 0x185   :  { %v505_v40 = vmul.f32 %v1003_v16, %v495_v39 }
 0x18c   :  { %v198_v4 = vpop.xlane.xlu2 %197 }
 0x1a4   :  { %v349_v58 = vpop.permute.xlu1 %348 }
 0x1a5   :  { %v359_v59 = vsel %vm1016_vm10, %v302_v46, %v349_v58 }
 0x1a6   :  { %v363_v60 = vmul.f32 %v359_v59, %v940_v0 }
 0x1a8   :  { %384 = vmatpush.msra.mxu2 %v363_v60 }
 0x1ac   :  { %v347_v14 = vpop.permute.xlu1 %346 }
 0x1ad   :  { %v358_v15 = vsel %vm1035_vm11, %v287_v52, %v347_v14 }
 0x1ae   :  { %v362_v18 = vmul.f32 %v358_v15, %v945_v1 }
 0x1b0   :  { %385 = vmatpush.msra.mxu2 %v362_v18 }
 0x1b1   :  { %747 = vmatmul.msk.f32.vlgmr.msra.gmra.mxu2 %vm141_vm0, %v1055_v20 }
 0x1b2   :  { %471 = vmatpush.msrb.mxu2 %v1060_v21 }
 0x1b4   :  { %472 = vmatpush.msrb.mxu2 %v1069_v23 }
 0x1b9   :  { %748 = vmatmul.msk.f32.gmra.mxu2 %vm141_vm0, %v1077_v25 }
 0x1c1   :  { %754 = vmatmul.msk.f32.vlgmr.msrb.gmra.mxu2 %vm141_vm0, %v951_v2  ;;  %v1100_v2 = vld [vmem:[%s1253_s3 + $0x18] sm:$0xff] }
 0x1c2   :  { %738 = vmatmul.msk.f32.gmra.mxu0 %vm141_vm0, %v1100_v2 }
 0x1c9   :  { %755 = vmatmul.msk.f32.gmra.mxu2 %vm141_vm0, %v977_v6  ;;  %v492_v6 = vmul.f32 %v1030_v63, %v1100_v2 }
 0x1cb   :  { %v502_v3 = vsel %vm141_vm0, %v492_v6, 0.0  ;;  %v675_v6 = vmul.f32 %v1030_v63, %v1055_v20  ;;  %v393_v63 = vmul.f32 %v984_v7, %v1055_v20 }
 0x1cc   :  { %503 = vadd.xlane.f32.xlu2 %v502_v3 }
 0x1cd   :  { %v677_v3 = vsel %vm141_vm0, %v675_v6, 0.0 }
 0x1d1   :  { %756 = vmatmul.msk.f32.gmra.mxu2 %vm141_vm0, %v67_v62 }
 0x1d4   :  { %399 = vadd.xlane.f32.xlu2 %v398_v5  ;;  %v207_v5 = vmul.f32 %v1003_v16, %v198_v4 }
 0x1d9   :  { %757 = vmatmul.msk.f32.gmra.mxu2 %vm141_vm0, %v1100_v2 }
 0x1dc   :  { %678 = vadd.xlane.f32.xlu2 %v677_v3 }
 0x234   :  { %v387_v31 = vpop.f32.mrf.mxu2 }
 0x235   :  { %749 = vmatmul.msk.f32.vlgmr.msra.gmra.mxu3 %vm209_vm1, %v387_v31  ;;  %v245_v31 = vpop.f32.mrf.mxu1 }
 0x23c   :  { %v390_v32 = vpop.f32.mrf.mxu2 }
 0x23d   :  { %750 = vmatmul.msk.f32.gmra.mxu3 %vm209_vm1, %v390_v32  ;;  %v246_v32 = vadd.f32 %v245_v31, %v207_v5 }
 0x23f   :  { %v180_v48 = vpop.f32.mrf.mxu0 }
 0x240   :  { %742 = vmatmul.msk.f32.gmra.mxu1 %vm209_vm1, %v180_v48 }
 0x244   :  { %v474_v33 = vpop.f32.mrf.mxu2 }
 0x245   :  { %758 = vmatmul.msk.f32.vlgmr.msrb.gmra.mxu3 %vm209_vm1, %v474_v33  ;;  %v680_v33 = vsel %vm141_vm0, %v676_v9, 0.0 }
 0x246   :  { %681 = vadd.xlane.f32.xlu2 %v680_v33 }
 0x24c   :  { %v477_v34 = vpop.f32.mrf.mxu2 }
 0x24d   :  { %759 = vmatmul.msk.f32.gmra.mxu3 %vm209_vm1, %v477_v34  ;;  %v256_v34 = vadd.f32 %v1006_v19, %v246_v32 }
 0x24f   :  { %v745_v36 = vmul.f32 -1.442695, %v256_v34 }
 0x254   :  { %v480_v37 = vpop.f32.mrf.mxu2 }
 0x255   :  { %760 = vmatmul.msk.f32.gmra.mxu3 %vm209_vm1, %v480_v37 }
 0x25c   :  { %v483_v28 = vpop.f32.mrf.mxu2 }
 0x25d   :  { %761 = vmatmul.msk.f32.gmra.mxu3 %vm209_vm1, %v483_v28 }
 0x2b8   :  { %v1117_v35 = vpop.f32.mrf.mxu3 }
 0x2bd   :  { %v248_v33 = vpop.f32.mrf.mxu1 }
 0x2c0   :  { %v1120_v38 = vpop.f32.mrf.mxu3 }
 0x2c8   :  { %v538_v41 = vpop.f32.mrf.mxu3 }
 0x2c9   :  { %v539_v42 = vadd.f32 %v538_v41, %v505_v40  ;;  %v189_v40 = vmul.f32 %v984_v7, %v1100_v2  ;;  %v501_v7 = vpop.xlane.xlu2 %500 }
 0x2cb   :  { %v550_v43 = vadd.f32 %v1006_v19, %v539_v42  ;;  %v199_v41 = vsel %vm141_vm0, %v189_v40, 0.0  ;;  %v84_v40 = vadd.s32 16, %v1013_v54 }
 0x2cd   :  { %v762_v44 = vmul.f32 -1.442695, %v550_v43 }
 0x2cf   :  { %789 = vpow2.f32 %v762_v44 }
 0x2d0   :  { %v541_v46 = vpop.f32.mrf.mxu3 }
 0x2d1   :  { %v542_v47 = vadd.f32 %v541_v46, %v506_v45  ;;  %v504_v3 = vpop.xlane.xlu2 %503 }
 0x2d2   :  { %v508_v4 = vmul.f32 %v1003_v16, %v504_v3 }
 0x2d3   :  { %v551_v49 = vadd.f32 %v1006_v19, %v542_v47 }
 0x2d5   :  { %v790_v50 = vpop.eup %789  ;;  %v763_v51 = vmul.f32 -1.442695, %v551_v49  ;;  %v395_v49 = vsel %vm141_vm0, %v393_v63, 0.0 }
 0x2d6   :  { %v566_v52 = vadd.f32 1.0, %v790_v50 }
 0x2d7   :  { %791 = vpow2.f32 %v763_v51 }
 0x2d8   :  { %793 = vrcp.f32 %v566_v52  ;;  %v581_v60 = vand.u32 2147483648, %v566_v52  ;;  %v579_v62 = vand.u32 2147483647, %v566_v52  ;;  %vm575_vm13 = vweird.f32 %v566_v52 }
 0x2da   :  { %v582_v12 = vor.u32 1.1754944e-38, %v581_v60  ;;  %vm580_vm15 = vcmp.eq.f32.partialorder %v579_v62, 8.507059e+37 }
 0x2dd   :  { %v792_v53 = vpop.eup %791 }
 0x2de   :  { %v794_v55 = vpop.eup %793  ;;  %v567_v56 = vadd.f32 1.0, %v792_v53  ;;  %v544_v53 = vpop.f32.mrf.mxu3 }
 0x2df   :  { %v571_v58 = vmul.f32 %v794_v55, %v566_v52  ;;  %vm576_vm12 = vweird.f32 %v794_v55  ;;  %v507_v52 = vmul.f32 %v1003_v16, %v501_v7 }
 0x2e0   :  { %795 = vrcp.f32 %v567_v56  ;;  %vm577_vm14 = vmor %vm575_vm13, %vm576_vm12  ;;  %v596_v18 = vand.u32 2147483648, %v567_v56  ;;  %v594_v24 = vand.u32 2147483647, %v567_v56  ;;  %vm590_vm3 = vweird.f32 %v567_v56 }
 0x2e1   :  { %v572_v59 = vsub.f32 1.0, %v571_v58  ;;  %797 = vpow2.f32 %v745_v36 }
 0x2e2   :  { %v597_v27 = vor.u32 1.1754944e-38, %v596_v18  ;;  %vm595_vm5 = vcmp.eq.f32.partialorder %v594_v24, 8.507059e+37 }
 0x2e3   :  { %v573_v61 = vmul.f32 %v794_v55, %v572_v59 }
 0x2e5   :  { %v574_v8 = vadd.f32 %v794_v55, %v573_v61 }
 0x2e6   :  { %v796_v11 = vpop.eup %795  ;;  %v547_v10 = vpop.f32.mrf.mxu3 }
 0x2e7   :  { %v578_v13 = vsel %vm577_vm14, %v794_v55, %v574_v8  ;;  %v586_v14 = vmul.f32 %v796_v11, %v567_v56  ;;  %vm591_vm2 = vweird.f32 %v796_v11  ;;  %v798_v37 = vpop.eup %797  ;;  %v545_v55 = vadd.f32 %v544_v53, %v507_v52 }
 0x2e8   :  { %v1127_v15 = vsel %vm580_vm15, %v582_v12, %v578_v13  ;;  %vm592_vm4 = vmor %vm590_vm3, %vm591_vm2  ;;  %v272_v39 = vadd.f32 1.0, %v798_v37 }
 0x2e9   :  { %634 = vrot.lane.b32.xlu1 %v1127_v15, %s875_s5  ;;  %v587_v17 = vsub.f32 1.0, %v586_v14  ;;  %v552_v56 = vadd.f32 %v1006_v19, %v545_v55 }
 0x2ea   :  { %799 = vrcp.f32 %v272_v39  ;;  %v315_v44 = vand.u32 2147483648, %v272_v39  ;;  %vm309_vm6 = vweird.f32 %v272_v39  ;;  %v313_v46 = vand.u32 2147483647, %v272_v39 }
 0x2eb   :  { %v588_v22 = vmul.f32 %v796_v11, %v587_v17  ;;  %v764_v58 = vmul.f32 -1.442695, %v552_v56 }
 0x2ec   :  { %v316_v48 = vor.u32 1.1754944e-38, %v315_v44  ;;  %vm314_vm9 = vcmp.eq.f32.partialorder %v313_v46, 8.507059e+37  ;;  %v1186_v44 = vld [vmem:[%s1258_s8] ss:$0 sm:$0xff] }
 0x2ed   :  { %v589_v26 = vadd.f32 %v796_v11, %v588_v22  ;;  %801 = vpow2.f32 %v764_v58 }
 0x2ef   :  { %v593_v29 = vsel %vm592_vm4, %v796_v11, %v589_v26 }
 0x2f0   :  { %v1132_v30 = vsel %vm595_vm5, %v597_v27, %v593_v29  ;;  %v800_v42 = vpop.eup %799 }
 0x2f1   :  { %636 = vrot.lane.b32.xlu0 %v1132_v30, %s875_s5  ;;  %v305_v43 = vmul.f32 %v800_v42, %v272_v39  ;;  %vm310_vm7 = vweird.f32 %v800_v42 }
 0x2f2   :  { %vm311_vm8 = vmor %vm309_vm6, %vm310_vm7 }
 0x2f3   :  { %v306_v45 = vsub.f32 1.0, %v305_v43  ;;  %v802_v59 = vpop.eup %801 }
 0x2f4   :  { %v568_v60 = vadd.f32 1.0, %v802_v59 }
 0x2f5   :  { %v307_v47 = vmul.f32 %v800_v42, %v306_v45 }
 0x2f6   :  { %803 = vrcp.f32 %v568_v60  ;;  %v611_v12 = vand.u32 2147483648, %v568_v60  ;;  %vm605_vm12 = vweird.f32 %v568_v60  ;;  %v609_v14 = vand.u32 2147483647, %v568_v60 }
 0x2f7   :  { %v308_v50 = vadd.f32 %v800_v42, %v307_v47  ;;  %v104_v47 = vand.u32 1, %v84_v40 }
 0x2f8   :  { %v612_v17 = vor.u32 1.1754944e-38, %v611_v12  ;;  %vm610_vm15 = vcmp.eq.f32.partialorder %v609_v14, 8.507059e+37 }
 0x2f9   :  { %v312_v2 = vsel %vm311_vm8, %v800_v42, %v308_v50  ;;  %vm1192_vm3 = vcmp.eq.s32.totalorder %v104_v47, 0 }
 0x2fa   :  { %v1150_v51 = vsel %vm314_vm9, %v316_v48, %v312_v2 }
 0x2fb   :  { %350 = vrot.lane.b32.xlu2 %v1150_v51, %s875_s5 }
 0x2fc   :  { %v804_v61 = vpop.eup %803 }
 0x2fd   :  { %v601_v62 = vmul.f32 %v804_v61, %v568_v60  ;;  %vm606_vm13 = vweird.f32 %v804_v61 }
 0x2fe   :  { %vm607_vm14 = vmor %vm605_vm12, %vm606_vm13 }
 0x2ff   :  { %v602_v8 = vsub.f32 1.0, %v601_v62 }
 0x301   :  { %v603_v11 = vmul.f32 %v804_v61, %v602_v8 }
 0x303   :  { %v604_v13 = vadd.f32 %v804_v61, %v603_v11 }
 0x305   :  { %v608_v22 = vsel %vm607_vm14, %v804_v61, %v604_v13 }
 0x306   :  { %v1156_v24 = vsel %vm610_vm15, %v612_v17, %v608_v22 }
 0x313   :  { %200 = vadd.xlane.f32.xlu1 %v199_v41 }
 0x31b   :  { %396 = vadd.xlane.f32.xlu0 %v395_v49 }
 0x32f   :  { %638 = vrot.lane.b32.xlu0 %v1156_v24, %s875_s5 }
 0x35b   :  { %v635_v18 = vpop.permute.xlu1 %634 }
 0x35c   :  { %v646_v27 = vsel %vm1035_vm11, %v1127_v15, %v635_v18  ;;  %v548_v15 = vadd.f32 %v547_v10, %v508_v4  ;;  %v85_v4 = vadd.s32 24, %v1013_v54 }
 0x35d   :  { %v650_v6 = vmul.f32 %v1069_v23, %v646_v27 }
 0x35e   :  { %v553_v57 = vadd.f32 %v1006_v19, %v548_v15  ;;  %v111_v15 = vand.u32 1, %v85_v4 }
 0x360   :  { %v765_v5 = vmul.f32 -1.442695, %v553_v57  ;;  %vm1217_vm8 = vcmp.eq.s32.totalorder %v111_v15, 0 }
 0x362   :  { %805 = vpow2.f32 %v765_v5 }
 0x363   :  { %v637_v26 = vpop.permute.xlu0 %636 }
 0x364   :  { %v647_v28 = vsel %vm1016_vm10, %v1132_v30, %v637_v26  ;;  %v1174_v30 = vpop.xlane.xlu2 %399 }
 0x365   :  { %v651_v29 = vmul.f32 %v1060_v21, %v647_v28 }
 0x367   :  { %666 = vmatpush.msrb.mxu0 %v651_v29 }
 0x368   :  { %v806_v31 = vpop.eup %805 }
 0x369   :  { %667 = vmatpush.msrb.mxu0 %v650_v6  ;;  %v569_v32 = vadd.f32 1.0, %v806_v31  ;;  %v405_v6 = vmul.f32 %v1186_v44, %v1174_v30 }
 0x36a   :  { %766 = vmatmul.msk.f32.vlgmr.msrb.gmra.mxu0 %vm141_vm0, %v1055_v20 }
 0x36b   :  { %807 = vrcp.f32 %v569_v32  ;;  %v626_v41 = vand.u32 2147483648, %v569_v32  ;;  %v624_v63 = vand.u32 2147483647, %v569_v32  ;;  %v433_v3 = vadd.f32 %v1120_v38, %v405_v6 }
 0x36c   :  { %v1176_v9 = vpop.xlane.xlu2 %678 }
 0x36d   :  { %v627_v48 = vor.u32 1.1754944e-38, %v626_v41  ;;  %vm625_vm2 = vcmp.eq.f32.partialorder %v624_v63, 8.507059e+37  ;;  %v683_v54 = vmul.f32 %v1186_v44, %v1176_v9 }
 0x371   :  { %v808_v36 = vpop.eup %807 }
 0x372   :  { %767 = vmatmul.msk.f32.gmra.mxu0 %vm141_vm0, %v1077_v25  ;;  %v616_v39 = vmul.f32 %v808_v36, %v569_v32  ;;  %vm620_vm0 = vweird.f32 %v569_v32  ;;  %vm621_vm10 = vweird.f32 %v808_v36 }
 0x373   :  { %vm622_vm11 = vmor %vm620_vm0, %vm621_vm10 }
 0x374   :  { %v1179_v37 = vpop.xlane.xlu2 %681  ;;  %v617_v43 = vsub.f32 1.0, %v616_v39 }
 0x375   :  { %v684_v40 = vmul.f32 %v1186_v44, %v1179_v37 }
 0x376   :  { %v618_v45 = vmul.f32 %v808_v36, %v617_v43 }
 0x378   :  { %v619_v50 = vadd.f32 %v808_v36, %v618_v45 }
 0x37a   :  { %v623_v7 = vsel %vm622_vm11, %v808_v36, %v619_v50 }
 0x37b   :  { %v1196_v55 = vsel %vm625_vm2, %v627_v48, %v623_v7 }
 0x37c   :  { %v351_v53 = vpop.permute.xlu2 %350  ;;  %640 = vrot.lane.b32.xlu2 %v1196_v55, %s875_s5 }
 0x37d   :  { %v360_v59 = vsel %vm1192_vm3, %v1150_v51, %v351_v53 }
 0x37e   :  { %v444_v60 = vsub.f32 1.0, %v360_v59  ;;  %v442_v61 = vmul.f32 %v360_v59, %v945_v1 }
 0x386   :  { %v201_v20 = vpop.xlane.xlu1 %200 }
 0x387   :  { %v208_v34 = vmul.f32 %v1003_v16, %v201_v20 }
 0x389   :  { %v249_v25 = vadd.f32 %v248_v33, %v208_v34 }
 0x38b   :  { %v257_v42 = vadd.f32 %v1006_v19, %v249_v25  ;;  %v1189_v19 = vld [vmem:[#allocation4] ss:$0 sm:$0xff] }
 0x38c   :  { %v439_v10 = vadd.f32 %v1189_v19, %v433_v3 }
 0x38d   :  { %v746_v16 = vmul.f32 -1.442695, %v257_v42 }
 0x38e   :  { %v397_v46 = vpop.xlane.xlu0 %396 }
 0x38f   :  { %809 = vpow2.f32 %v746_v16  ;;  %v404_v49 = vmul.f32 %v1186_v44, %v397_v46 }
 0x391   :  { %v430_v2 = vadd.f32 %v1117_v35, %v404_v49 }
 0x393   :  { %v438_v56 = vadd.f32 %v1189_v19, %v430_v2 }
 0x395   :  { %v810_v58 = vpop.eup %809  ;;  %811 = vtanh.f32 %v438_v56 }
 0x396   :  { %v273_v35 = vadd.f32 1.0, %v810_v58 }
 0x398   :  { %813 = vrcp.f32 %v273_v35  ;;  %v330_v14 = vand.u32 2147483648, %v273_v35  ;;  %vm324_vm4 = vweird.f32 %v273_v35  ;;  %v328_v51 = vand.u32 2147483647, %v273_v35 }
 0x399   :  { %815 = vtanh.f32 %v439_v10 }
 0x39a   :  { %v331_v22 = vor.u32 1.1754944e-38, %v330_v14  ;;  %vm329_vm7 = vcmp.eq.f32.partialorder %v328_v51, 8.507059e+37 }
 0x39b   :  { %v812_v62 = vpop.eup %811 }
 0x39c   :  { %v446_v8 = vmul.f32 %v812_v62, %v444_v60 }
 0x39e   :  { %v814_v11 = vpop.eup %813  ;;  %v448_v12 = vadd.f32 %v446_v8, %v442_v61 }
 0x39f   :  { %v320_v13 = vmul.f32 %v814_v11, %v273_v35  ;;  %vm325_vm5 = vweird.f32 %v814_v11  ;;  %v816_v20 = vpop.eup %815 }
 0x3a0   :  { %450 = vst.msk [vmem:[%s1260_s10] sm:$0xff] %vm209_vm1, %v448_v12  ;;  %vm326_vm6 = vmor %vm324_vm4, %vm325_vm5 }
 0x3a1   :  { %v321_v17 = vsub.f32 1.0, %v320_v13  ;;  %v639_v39 = vpop.permute.xlu0 %638 }
 0x3a3   :  { %v322_v18 = vmul.f32 %v814_v11, %v321_v17 }
 0x3a5   :  { %v323_v26 = vadd.f32 %v814_v11, %v322_v18 }
 0x3a7   :  { %v327_v1 = vsel %vm326_vm6, %v814_v11, %v323_v26 }
 0x3a8   :  { %v332_v27 = vsel %vm329_vm7, %v331_v22, %v327_v1 }
 0x3a9   :  { %352 = vrot.lane.b32.xlu1 %v332_v27, %s875_s5 }
 0x3d6   :  { %v641_v45 = vpop.permute.xlu2 %640 }
 0x3d7   :  { %v649_v37 = vsel %vm1217_vm8, %v1196_v55, %v641_v45 }
 0x3d8   :  { %v719_v48 = vmul.f32 %v1060_v21, %v649_v37 }
 0x3e7   :  { %v669_v28 = vpop.f32.mrf.mxu0 }
 0x3e8   :  { %768 = vmatmul.msk.f32.vlgmr.msrb.gmra.mxu1 %vm209_vm1, %v669_v28 }
 0x3ef   :  { %v672_v29 = vpop.f32.mrf.mxu0 }
 0x3f0   :  { %769 = vmatmul.msk.f32.gmra.mxu1 %vm209_vm1, %v672_v29 }
 0x41b   :  { %v353_v5 = vpop.permute.xlu1 %352 }
 0x41c   :  { %v361_v31 = vsel %vm1217_vm8, %v332_v27, %v353_v5 }
 0x41d   :  { %v445_v32 = vsub.f32 1.0, %v361_v31  ;;  %v443_v30 = vmul.f32 %v361_v31, %v940_v0  ;;  %v648_v0 = vsel %vm1192_vm3, %v1156_v24, %v639_v39  ;;  %v721_v24 = vsub.f32 1.0, %v649_v37 }
 0x41e   :  { %v720_v43 = vsub.f32 1.0, %v648_v0  ;;  %v718_v9 = vmul.f32 %v1069_v23, %v648_v0 }
 0x41f   :  { %v447_v33 = vmul.f32 %v816_v20, %v445_v32 }
 0x421   :  { %v449_v38 = vadd.f32 %v447_v33, %v443_v30 }
 0x423   :  { %451 = vst.msk [vmem:[%s1260_s10 + $0x8] sm:$0xff] %vm209_vm1, %v449_v38 }
 0x465   :  { %v708_v34 = vpop.f32.mrf.mxu1 }
 0x466   :  { %v709_v36 = vadd.f32 %v708_v34, %v683_v54 }
 0x468   :  { %v714_v25 = vadd.f32 %v1189_v19, %v709_v36 }
 0x46a   :  { %817 = vtanh.f32 %v714_v25 }
 0x46d   :  { %v711_v41 = vpop.f32.mrf.mxu1 }
 0x46e   :  { %v712_v42 = vadd.f32 %v711_v41, %v684_v40 }
 0x470   :  { %v818_v63 = vpop.eup %817  ;;  %v715_v16 = vadd.f32 %v1189_v19, %v712_v42 }
 0x471   :  { %v722_v46 = vmul.f32 %v818_v63, %v720_v43 }
 0x472   :  { %819 = vtanh.f32 %v715_v16 }
 0x473   :  { %v724_v47 = vadd.f32 %v722_v46, %v718_v9 }
 0x475   :  { %770 = vst.msk [vmem:[%s1260_s10 + $0x10] sm:$0xff] %vm209_vm1, %v724_v47 }
 0x478   :  { %v820_v44 = vpop.eup %819 }
 0x479   :  { %v723_v49 = vmul.f32 %v820_v44, %v721_v24 }
 0x47b   :  { %v725_v50 = vadd.f32 %v723_v49, %v719_v48 }
 0x47d   :  { %771 = vst.msk [vmem:[%s1260_s10 + $0x18] sm:$0xff] %vm209_vm1, %v725_v50 }
 0x47e   :  { %733 = vsyncpa [#allocation3], 1 }
 0x47f   :  { %734 = vsyncpa [#allocation5], 1 }

</bundles_post_ra>
